<compile_context>
chip_gen: v7x
topology: tpu7x:2x2x1
jax: 0.10.0
libtpu: 0.0.40
codegen_flags: <defaults>
</compile_context>

<pallas_src>
import jax
import jax.numpy as jnp
from jax import lax
from jax.experimental import pallas as pl
from jax.experimental.pallas import tpu as pltpu

D_IN = 768   # backbone embedding dim (hardcoded in the module)
D_OUT = 512  # CLIP alignment dim (hardcoded in the module)


def _round_up(x, m):
    return ((x + m - 1) // m) * m


def _align_kernel(cls_ref, w_ref, b_ref, o_ref):
    # cls_ref: (TM, D)   CLS activations for this batch tile
    # w_ref  : (O, D)    nn.Linear weight (out, in) layout, VMEM-resident across tiles
    # b_ref  : (1, O)    bias (f32)
    # o_ref  : (TM, O)   aligned features
    # Contract cls's last dim with weight's last dim: cls @ W^T, f32 accumulation.
    proj = lax.dot_general(
        cls_ref[...], w_ref[...],
        dimension_numbers=(((1,), (1,)), ((), ())),
        preferred_element_type=jnp.float32,
    )                                                   # (TM, O), f32
    o_ref[...] = (proj + b_ref[...]).astype(o_ref.dtype)


def alignment_forward(x_enc, weight, bias, *, compute_dtype=None):
    """Forward of Alignment_Model's post-backbone path.

    x_enc : (B, S, 768)  encoder output (any float dtype)
    weight: (512, 768)   nn.Linear weight (out, in) layout -- NOT transposed here
    bias  : (512,)       nn.Linear bias
    compute_dtype: optional dtype for the matmul operands (e.g. jnp.bfloat16);
                   accumulation and bias add stay in f32.
    Returns (B, 512) float32.
    """
    B, S, D = x_enc.shape
    O = weight.shape[0]
    assert D == weight.shape[1]

    # ---- CLS-only slice in the wrapper: only (B, D) reaches the kernel. ----
    cls = x_enc[:, 0, :]                              # (B, D)

    if compute_dtype is not None:
        cls = cls.astype(compute_dtype)
        weight = weight.astype(compute_dtype)
    bias2 = bias.astype(jnp.float32).reshape(1, O)    # keep bias add in f32

    # ---- Batch tiling: TM multiple of 8 (sublane), capped at 256 (MXU M). ----
    TM = min(256, _round_up(B, 8))
    B_pad = _round_up(B, TM)
    if B_pad != B:
        cls = jnp.pad(cls, ((0, B_pad - B), (0, 0)))
    grid = (B_pad // TM,)

    out = pl.pallas_call(
        _align_kernel,
        out_shape=jax.ShapeDtypeStruct((B_pad, O), jnp.float32),
        grid=grid,
        in_specs=[
            pl.BlockSpec((TM, D), lambda i: (i, 0)),   # batch tile of CLS rows
            pl.BlockSpec((O, D), lambda i: (0, 0)),    # weight: resident across tiles
            pl.BlockSpec((1, O), lambda i: (0, 0)),    # bias:   resident across tiles
        ],
        out_specs=pl.BlockSpec((TM, O), lambda i: (i, 0)),
        compiler_params=pltpu.CompilerParams(
            dimension_semantics=("parallel",)),        # v7x: shard tiles over 2 TCs
    )(cls, weight, bias2)

    return out[:B] if B_pad != B else out


def init_params(key):
    """Deterministic stand-in for the CLIP ViT-B/16 visual.proj alignment matrix."""
    k_align, k_bias = jax.random.split(key)
    # alignment_matrix: (768, 512), CLIP init scale ~ d^-0.5
    alignment_matrix = jax.random.normal(k_align, (D_IN, D_OUT), jnp.float32) * (D_IN ** -0.5)
    # nn.Linear weight is (out, in); the module copies alignment_matrix.t() into it.
    weight = alignment_matrix.T                                      # (512, 768)
    # nn.Linear default bias init: U(-1/sqrt(in), 1/sqrt(in))
    bound = 1.0 / (D_IN ** 0.5)
    bias = jax.random.uniform(k_bias, (D_OUT,), jnp.float32, -bound, bound)
    return weight, bias


if __name__ == "__main__":
    key = jax.random.PRNGKey(0)
    k_params, k_x = jax.random.split(key)

    weight, bias = init_params(k_params)

    # Small encoded-sequence input consistent with the module's post-backbone shape:
    # batch=2, seq=8 tokens (first token = CLS), hidden=768.
    B, S = 2, 8
    x_enc = jax.random.normal(k_x, (B, S, D_IN), jnp.float32)

    # Reference (plain JAX) for the same semantics: linear(x[:, 0, :]).
    ref = x_enc[:, 0, :] @ weight.T + bias

    # f32 path.
    out = alignment_forward(x_enc, weight, bias)
    out = jax.block_until_ready(out)
    assert out.shape == (B, D_OUT)
    assert jnp.allclose(out, ref, atol=1e-4, rtol=1e-4)

    # bf16 compute path (f32 accumulation); memory-bound win, looser tolerance.
    out_bf16 = alignment_forward(x_enc, weight, bias, compute_dtype=jnp.bfloat16)
    out_bf16 = jax.block_until_ready(out_bf16)
    assert out_bf16.shape == (B, D_OUT)
    assert jnp.allclose(out_bf16, ref, atol=5e-2, rtol=5e-2)

    print("KERNEL_OK")
</pallas_src>

<mosaic_0001>
module attributes {stable_mosaic.version = 11 : i64} {
  func.func @_align_kernel(%arg0: i32, %arg1: memref<8x768xf32, #tpu.memory_space<vmem>>, %arg2: memref<512x768xf32, #tpu.memory_space<vmem>>, %arg3: memref<1x512xf32, #tpu.memory_space<vmem>>, %arg4: memref<8x512xf32, #tpu.memory_space<vmem>>) attributes {dimension_semantics = [#tpu.dimension_semantics<parallel>], iteration_bounds = array<i64: 1>, scalar_prefetch = 0 : i64, scratch_operands = 0 : i64, tpu.core_type = #tpu.core_type<tc>, window_params = [{transform_indices = @transform_0, window_bounds = array<i64: 8, 768>}, {pipeline_mode = #tpu.pipeline_mode<synchronous>, transform_indices = @transform_1, window_bounds = array<i64: 512, 768>}, {pipeline_mode = #tpu.pipeline_mode<synchronous>, transform_indices = @transform_2, window_bounds = array<i64: 1, 512>}, {transform_indices = @transform_3, window_bounds = array<i64: 8, 512>}]} {
    %c0 = arith.constant 0 : index
    %c0_0 = arith.constant 0 : index
    %0 = vector.load %arg1[%c0, %c0_0] : memref<8x768xf32, #tpu.memory_space<vmem>>, vector<8x768xf32>
    %c0_1 = arith.constant 0 : index
    %c0_2 = arith.constant 0 : index
    %1 = vector.load %arg2[%c0_1, %c0_2] : memref<512x768xf32, #tpu.memory_space<vmem>>, vector<512x768xf32>
    %cst = arith.constant dense<0.000000e+00> : vector<8x512xf32>
    %2 = tpu.matmul %0, %1, %cst {dimension_numbers = #tpu.dot_dimension_numbers<[1], [1], [0], [0], [0, 0, 1, 0], [], []>} : vector<8x768xf32>, vector<512x768xf32>, vector<8x512xf32> -> vector<8x512xf32>
    %c0_3 = arith.constant 0 : index
    %c0_4 = arith.constant 0 : index
    %3 = vector.load %arg3[%c0_3, %c0_4] : memref<1x512xf32, #tpu.memory_space<vmem>>, vector<1x512xf32>
    %4 = vector.broadcast %3 : vector<1x512xf32> to vector<8x512xf32>
    %5 = arith.addf %2, %4 : vector<8x512xf32>
    %c0_5 = arith.constant 0 : index
    %c0_6 = arith.constant 0 : index
    %6 = vector.load %arg4[%c0_5, %c0_6] : memref<8x512xf32, #tpu.memory_space<vmem>>, vector<8x512xf32>
    tpu.vector_store %arg4[%c0_5, %c0_6], %5 {strides = array<i32>} : memref<8x512xf32, #tpu.memory_space<vmem>>, vector<8x512xf32>,
    return
  }
  func.func @transform_0(%arg0: i32) -> (i32, i32) {
    %c0_i32 = arith.constant 0 : i32
    %c0_i32_0 = arith.constant 0 : i32
    return %arg0, %c0_i32 : i32, i32
  }
  func.func @transform_1(%arg0: i32) -> (i32, i32) {
    %c0_i32 = arith.constant 0 : i32
    %c0_i32_0 = arith.constant 0 : i32
    %c0_i32_1 = arith.constant 0 : i32
    return %c0_i32, %c0_i32_0 : i32, i32
  }
  func.func @transform_2(%arg0: i32) -> (i32, i32) {
    %c0_i32 = arith.constant 0 : i32
    %c0_i32_0 = arith.constant 0 : i32
    %c0_i32_1 = arith.constant 0 : i32
    return %c0_i32, %c0_i32_0 : i32, i32
  }
  func.func @transform_3(%arg0: i32) -> (i32, i32) {
    %c0_i32 = arith.constant 0 : i32
    %c0_i32_0 = arith.constant 0 : i32
    return %arg0, %c0_i32 : i32, i32
  }
}

</mosaic_0001>

<bundles_post_ra>
// kernel: tpu_custom_call.1
= control target key start
LH: loop header
LB: loop body
LE: loop exit
PB: predicated region body
PF: predicated region fallthrough
CT: control target
= control target key end

     0   :  { %8 = vsyncpa [#allocation3], 0  ;;  %s1480_s0 = inlined_call_operand.hbm [shape: f32[8,768], index: 0, kind: input, shape index: {}]   ;;  %s1481_s1 = inlined_call_operand.hbm [shape: f32[512,768], index: 1, kind: input, shape index: {}]   ;;  %s1482_s2 = inlined_call_operand.hbm [shape: f32[1,512], index: 2, kind: input, shape index: {}]   ;;  %s1483_s3 = inlined_call_operand.hbm [shape: f32[8,512], index: 3, kind: output, shape index: {}]  }
   0x1   :  { %9 = vsyncpa [#allocation6], 0 }
   0x2   :  { %10 = vsyncpa [#allocation4], 0  ;;  %s1406_s12 = smov [#allocation5]   ;;  %s1312_s16 = scalar_lea.hbm %s1481_s1, 49152 }
   0x3   :  { %s26_s13 = sshll.u32 %s1406_s12, 4  ;;  %p1313_p0 = scmp.ne.s32.totalorder %s1481_s1, %s1312_s16  ;;  %s27_s13 = int_to_ptr.vmem [resolvable:$true] %s26_s13 }
   0x4   :  { %p1316_p1 = scmp.lt.u32.totalorder %s1312_s16, %s1481_s1 }
   0x6   :  { %p1318_p2 = pnand %p1316_p1, %p1313_p0 }
   0x8   :  { %1321 = shalt.err (!%p1318_p2)
}
   0x9   :  { %s1322_s21 = scalar_lea.vmem %s27_s13, 49152  ;;  %p1327_p4 = scmp.lt.s32.totalorder %s27_s13, %s27_s13 }
   0xa   :  { %p1323_p3 = scmp.ne.s32.totalorder %s27_s13, %s1322_s21  ;;  %p1328_p5 = scmp.lt.s32.totalorder %s1322_s21, %s1322_s21 }
   0xc   :  { %p1329_p6 = por %p1328_p5, %p1327_p4 }
   0xe   :  { %p1330_p7 = pnand %p1329_p6, %p1323_p3 }
  0x10   :  { %1333 = shalt.err (!%p1330_p7)
}
  0x11   :  { %s1407_s22 = smov 768   ;;  %s1408_s23 = smov 48  }
  0x12   :  { %32 = dma.hbm_to_vmem [thread:$0]  %s1481_s1, 49152, %s27_s13, [#allocation6], %s1407_s22, %s1407_s22, %s1408_s23  }
  0x13   :  { %s1409_s26 = smov [#allocation2]   ;;  %s1410_s28 = smov [#allocation7]  }
  0x14   :  { %s17_s27 = sshll.u32 %s1409_s26, 4  ;;  %s39_s29 = sshll.u32 %s1410_s28, 4  ;;  %s18_s27 = int_to_ptr.vmem [resolvable:$true] %s17_s27  ;;  %s40_s29 = int_to_ptr.vmem [resolvable:$true] %s39_s29 }
  0x15   :  { %s1334_s5 = scalar_lea.hbm %s1480_s0, 768 }
  0x16   :  { %p1335_p8 = scmp.ne.s32.totalorder %s1480_s0, %s1334_s5  ;;  %p1338_p9 = scmp.lt.u32.totalorder %s1334_s5, %s1480_s0 }
  0x18   :  { %p1340_p10 = pnand %p1338_p9, %p1335_p8 }
  0x1a   :  { %1343 = shalt.err (!%p1340_p10)
}
  0x1b   :  { %s1344_s1 = scalar_lea.vmem %s18_s27, 768  ;;  %p1349_p12 = scmp.lt.s32.totalorder %s18_s27, %s18_s27 }
  0x1c   :  { %p1345_p11 = scmp.ne.s32.totalorder %s18_s27, %s1344_s1  ;;  %p1350_p13 = scmp.lt.s32.totalorder %s1344_s1, %s1344_s1 }
  0x1e   :  { %p1351_p0 = por %p1350_p13, %p1349_p12 }
  0x20   :  { %p1352_p1 = pnand %p1351_p0, %p1345_p11 }
  0x22   :  { %1355 = shalt.err (!%p1352_p1)
}
  0x23   :  { %20 = dma.hbm_to_vmem [thread:$0]  %s1480_s0, 768, %s18_s27, [#allocation3]  }
  0x24   :  { %s1356_s14 = scalar_lea.hbm %s1482_s2, 64 }
  0x25   :  { %p1357_p2 = scmp.ne.s32.totalorder %s1482_s2, %s1356_s14  ;;  %p1360_p3 = scmp.lt.u32.totalorder %s1356_s14, %s1482_s2 }
  0x27   :  { %p1362_p4 = pnand %p1360_p3, %p1357_p2 }
  0x29   :  { %1365 = shalt.err (!%p1362_p4)
}
  0x2a   :  { %s1366_s19 = scalar_lea.vmem %s40_s29, 64  ;;  %p1371_p6 = scmp.lt.s32.totalorder %s40_s29, %s40_s29 }
  0x2b   :  { %p1367_p5 = scmp.ne.s32.totalorder %s40_s29, %s1366_s19  ;;  %p1372_p7 = scmp.lt.s32.totalorder %s1366_s19, %s1366_s19 }
  0x2d   :  { %p1373_p8 = por %p1372_p7, %p1371_p6 }
  0x2f   :  { %p1374_p9 = pnand %p1373_p8, %p1367_p5 }
  0x31   :  { %1377 = shalt.err (!%p1374_p9)
}
  0x32   :  { %42 = dma.hbm_to_vmem [thread:$0]  %s1482_s2, 64, %s40_s29, [#allocation6]  }
  0x33   :  { %1400 = dma.done.wait [#allocation3], 768  }
  0x34   :  { %1401 = vsyncadd [#allocation3], 4294966528 }
  0x35   :  { %1402 = dma.done.wait [#allocation6], 49216  }
  0x36   :  { %1403 = vsyncadd [#allocation6], 4294918080  ;;  %v59_v0 = vld [vmem:[#allocation5 + $0x8] sm:$0xff]  ;;  %v65_v1 = vld [vmem:[#allocation5 + $0x38] sm:$0xff]  ;;  %s1411_s2 = smov [#allocation8]  }
  0x37   :  { %v251_v2 = vld [vmem:[#allocation5 + $0x608] sm:$0xff]  ;;  %v910_v3 = vpack.c.bf16 %v65_v1, %v59_v0  ;;  %v257_v4 = vld [vmem:[#allocation5 + $0x638] sm:$0xff]  ;;  %v58_v5 = vld [vmem:[#allocation5] sm:$0xff]  ;;  %s900_s21 = sshll.u32 %s1411_s2, 4  ;;  %s901_s21 = int_to_ptr.vmem [resolvable:$true] %s900_s21 }
  0x38   :  { %v64_v6 = vld [vmem:[#allocation5 + $0x30] sm:$0xff]  ;;  %v1102_v7 = vpack.c.bf16 %v257_v4, %v251_v2  ;;  %v250_v9 = vld [vmem:[#allocation5 + $0x600] sm:$0xff]  ;;  %v71_v11 = vld [vmem:[#allocation5 + $0x68] sm:$0xff]  ;;  %s1378_s22 = scalar_lea.vmem %s901_s21, 512  ;;  %p1383_p11 = scmp.lt.s32.totalorder %s901_s21, %s901_s21 }
  0x39   :  { %v912_v8 = vpack.c.bf16 %v64_v6, %v58_v5  ;;  %v256_v10 = vld [vmem:[#allocation5 + $0x630] sm:$0xff]  ;;  %911 = vmatprep.subr.bf16.mxu0 %v910_v3  ;;  %v77_v13 = vld [vmem:[#allocation5 + $0x98] sm:$0xff]  ;;  %v263_v14 = vld [vmem:[#allocation5 + $0x668] sm:$0xff]  ;;  %p1379_p10 = scmp.ne.s32.totalorder %s901_s21, %s1378_s22  ;;  %p1384_p12 = scmp.lt.s32.totalorder %s1378_s22, %s1378_s22 }
  0x3a   :  { %v1104_v12 = vpack.c.bf16 %v256_v10, %v250_v9  ;;  %v269_v15 = vld [vmem:[#allocation5 + $0x698] sm:$0xff]  ;;  %1103 = vmatprep.subr.bf16.mxu1 %v1102_v7  ;;  %v914_v16 = vpack.c.bf16 %v77_v13, %v71_v11  ;;  %v70_v18 = vld [vmem:[#allocation5 + $0x60] sm:$0xff]  ;;  %v76_v19 = vld [vmem:[#allocation5 + $0x90] sm:$0xff] }
  0x3b   :  { %913 = vmatpush1.bf16.xpose.msra.mxu0 %v912_v8  ;;  %v1106_v17 = vpack.c.bf16 %v269_v15, %v263_v14  ;;  %v262_v20 = vld [vmem:[#allocation5 + $0x660] sm:$0xff]  ;;  %v268_v21 = vld [vmem:[#allocation5 + $0x690] sm:$0xff]  ;;  %v83_v22 = vld [vmem:[#allocation5 + $0xc8] sm:$0xff]  ;;  %v916_v26 = vpack.c.bf16 %v76_v19, %v70_v18  ;;  %p1385_p13 = por %p1384_p12, %p1383_p11 }
  0x3c   :  { %1105 = vmatpush1.bf16.xpose.msra.mxu1 %v1104_v12  ;;  %915 = vmatprep.subr.bf16.mxu0 %v914_v16  ;;  %v89_v23 = vld [vmem:[#allocation5 + $0xf8] sm:$0xff]  ;;  %v275_v24 = vld [vmem:[#allocation5 + $0x6c8] sm:$0xff]  ;;  %v1108_v27 = vpack.c.bf16 %v268_v21, %v262_v20  ;;  %v82_v30 = vld [vmem:[#allocation5 + $0xc0] sm:$0xff] }
  0x3d   :  { %1107 = vmatprep.subr.bf16.mxu1 %v1106_v17  ;;  %v281_v25 = vld [vmem:[#allocation5 + $0x6f8] sm:$0xff]  ;;  %v918_v28 = vpack.c.bf16 %v89_v23, %v83_v22  ;;  %v88_v31 = vld [vmem:[#allocation5 + $0xf0] sm:$0xff]  ;;  %v274_v32 = vld [vmem:[#allocation5 + $0x6c0] sm:$0xff]  ;;  %p1386_p0 = pnand %p1385_p13, %p1379_p10 }
  0x3e   :  { %v1110_v29 = vpack.c.bf16 %v281_v25, %v275_v24  ;;  %v280_v33 = vld [vmem:[#allocation5 + $0x6f0] sm:$0xff]  ;;  %v95_v34 = vld [vmem:[#allocation5 + $0x128] sm:$0xff]  ;;  %v101_v35 = vld [vmem:[#allocation5 + $0x158] sm:$0xff]  ;;  %v920_v38 = vpack.c.bf16 %v88_v31, %v82_v30 }
  0x3f   :  { %v287_v36 = vld [vmem:[#allocation5 + $0x728] sm:$0xff]  ;;  %v293_v37 = vld [vmem:[#allocation5 + $0x758] sm:$0xff]  ;;  %v1112_v39 = vpack.c.bf16 %v280_v33, %v274_v32  ;;  %v922_v40 = vpack.c.bf16 %v101_v35, %v95_v34  ;;  %v94_v42 = vld [vmem:[#allocation5 + $0x120] sm:$0xff] }
  0x40   :  { %v1114_v41 = vpack.c.bf16 %v293_v37, %v287_v36  ;;  %v100_v43 = vld [vmem:[#allocation5 + $0x150] sm:$0xff]  ;;  %v286_v44 = vld [vmem:[#allocation5 + $0x720] sm:$0xff]  ;;  %v107_v46 = vld [vmem:[#allocation5 + $0x188] sm:$0xff] }
  0x41   :  { %v292_v45 = vld [vmem:[#allocation5 + $0x750] sm:$0xff]  ;;  %v113_v47 = vld [vmem:[#allocation5 + $0x1b8] sm:$0xff]  ;;  %v299_v48 = vld [vmem:[#allocation5 + $0x788] sm:$0xff]  ;;  %v924_v50 = vpack.c.bf16 %v100_v43, %v94_v42 }
  0x42   :  { %v305_v49 = vld [vmem:[#allocation5 + $0x7b8] sm:$0xff]  ;;  %v1116_v51 = vpack.c.bf16 %v292_v45, %v286_v44  ;;  %v926_v52 = vpack.c.bf16 %v113_v47, %v107_v46  ;;  %v106_v54 = vld [vmem:[#allocation5 + $0x180] sm:$0xff]  ;;  %v112_v55 = vld [vmem:[#allocation5 + $0x1b0] sm:$0xff] }
  0x43   :  { %917 = vmatpush1.bf16.xpose.msra.mxu0 %v916_v26  ;;  %v1118_v53 = vpack.c.bf16 %v305_v49, %v299_v48  ;;  %v298_v56 = vld [vmem:[#allocation5 + $0x780] sm:$0xff]  ;;  %v304_v57 = vld [vmem:[#allocation5 + $0x7b0] sm:$0xff]  ;;  %v119_v58 = vld [vmem:[#allocation5 + $0x1e8] sm:$0xff]  ;;  %v928_v62 = vpack.c.bf16 %v112_v55, %v106_v54 }
  0x44   :  { %1109 = vmatpush1.bf16.xpose.msra.mxu1 %v1108_v27  ;;  %919 = vmatprep.subr.bf16.mxu0 %v918_v28  ;;  %v125_v59 = vld [vmem:[#allocation5 + $0x218] sm:$0xff]  ;;  %v311_v60 = vld [vmem:[#allocation5 + $0x7e8] sm:$0xff]  ;;  %v1120_v63 = vpack.c.bf16 %v304_v57, %v298_v56  ;;  %v118_v2 = vld [vmem:[#allocation5 + $0x1e0] sm:$0xff] }
  0x45   :  { %1111 = vmatprep.subr.bf16.mxu1 %v1110_v29  ;;  %v317_v61 = vld [vmem:[#allocation5 + $0x818] sm:$0xff]  ;;  %v930_v0 = vpack.c.bf16 %v125_v59, %v119_v58  ;;  %v124_v3 = vld [vmem:[#allocation5 + $0x210] sm:$0xff]  ;;  %v310_v4 = vld [vmem:[#allocation5 + $0x7e0] sm:$0xff] }
  0x46   :  { %v1122_v1 = vpack.c.bf16 %v317_v61, %v311_v60  ;;  %v316_v5 = vld [vmem:[#allocation5 + $0x810] sm:$0xff]  ;;  %v131_v6 = vld [vmem:[#allocation5 + $0x248] sm:$0xff]  ;;  %v137_v7 = vld [vmem:[#allocation5 + $0x278] sm:$0xff]  ;;  %v932_v10 = vpack.c.bf16 %v124_v3, %v118_v2 }
  0x47   :  { %v323_v8 = vld [vmem:[#allocation5 + $0x848] sm:$0xff]  ;;  %v329_v9 = vld [vmem:[#allocation5 + $0x878] sm:$0xff]  ;;  %v1124_v11 = vpack.c.bf16 %v316_v5, %v310_v4  ;;  %v934_v12 = vpack.c.bf16 %v137_v7, %v131_v6  ;;  %v130_v15 = vld [vmem:[#allocation5 + $0x240] sm:$0xff] }
  0x48   :  { %v1126_v13 = vpack.c.bf16 %v329_v9, %v323_v8  ;;  %v53_v14 = vld [vmem:[#allocation2 + $0x8] sm:$0xff]  ;;  %v136_v16 = vld [vmem:[#allocation5 + $0x270] sm:$0xff]  ;;  %v322_v17 = vld [vmem:[#allocation5 + $0x840] sm:$0xff] }
  0x49   :  { %528 = vmatprep.mubr.f32.mxu0 %v53_v14  ;;  %741 = vmatprep.mubr.f32.mxu1 %v53_v14  ;;  %v328_v18 = vld [vmem:[#allocation5 + $0x870] sm:$0xff]  ;;  %v143_v19 = vld [vmem:[#allocation5 + $0x2a8] sm:$0xff]  ;;  %v149_v20 = vld [vmem:[#allocation5 + $0x2d8] sm:$0xff]  ;;  %v936_v23 = vpack.c.bf16 %v136_v16, %v130_v15 }
  0x4a   :  { %v335_v21 = vld [vmem:[#allocation5 + $0x8a8] sm:$0xff]  ;;  %v341_v22 = vld [vmem:[#allocation5 + $0x8d8] sm:$0xff]  ;;  %v1128_v24 = vpack.c.bf16 %v328_v18, %v322_v17  ;;  %v938_v25 = vpack.c.bf16 %v149_v20, %v143_v19  ;;  %v142_v27 = vld [vmem:[#allocation5 + $0x2a0] sm:$0xff] }
  0x4b   :  { %921 = vmatpush1.bf16.xpose.msra.mxu0 %v920_v38  ;;  %v1130_v26 = vpack.c.bf16 %v341_v22, %v335_v21  ;;  %v148_v28 = vld [vmem:[#allocation5 + $0x2d0] sm:$0xff]  ;;  %v334_v29 = vld [vmem:[#allocation5 + $0x8a0] sm:$0xff]  ;;  %v155_v31 = vld [vmem:[#allocation5 + $0x308] sm:$0xff] }
  0x4c   :  { %1113 = vmatpush1.bf16.xpose.msra.mxu1 %v1112_v39  ;;  %923 = vmatprep.subr.bf16.mxu0 %v922_v40  ;;  %v340_v30 = vld [vmem:[#allocation5 + $0x8d0] sm:$0xff]  ;;  %v161_v32 = vld [vmem:[#allocation5 + $0x338] sm:$0xff]  ;;  %v347_v33 = vld [vmem:[#allocation5 + $0x908] sm:$0xff]  ;;  %v940_v35 = vpack.c.bf16 %v148_v28, %v142_v27 }
  0x4d   :  { %1115 = vmatprep.subr.bf16.mxu1 %v1114_v41  ;;  %v353_v34 = vld [vmem:[#allocation5 + $0x938] sm:$0xff]  ;;  %v1132_v36 = vpack.c.bf16 %v340_v30, %v334_v29  ;;  %v942_v37 = vpack.c.bf16 %v161_v32, %v155_v31  ;;  %v154_v39 = vld [vmem:[#allocation5 + $0x300] sm:$0xff]  ;;  %v160_v40 = vld [vmem:[#allocation5 + $0x330] sm:$0xff] }
  0x4e   :  { %v1134_v38 = vpack.c.bf16 %v353_v34, %v347_v33  ;;  %v346_v41 = vld [vmem:[#allocation5 + $0x900] sm:$0xff]  ;;  %v352_v42 = vld [vmem:[#allocation5 + $0x930] sm:$0xff]  ;;  %v167_v43 = vld [vmem:[#allocation5 + $0x368] sm:$0xff]  ;;  %v944_v47 = vpack.c.bf16 %v160_v40, %v154_v39 }
  0x4f   :  { %v173_v44 = vld [vmem:[#allocation5 + $0x398] sm:$0xff]  ;;  %v359_v45 = vld [vmem:[#allocation5 + $0x968] sm:$0xff]  ;;  %v1136_v48 = vpack.c.bf16 %v352_v42, %v346_v41  ;;  %v364_v54 = vld [vmem:[#allocation5 + $0x990] sm:$0xff] }
  0x50   :  { %v365_v46 = vld [vmem:[#allocation5 + $0x998] sm:$0xff]  ;;  %v946_v49 = vpack.c.bf16 %v173_v44, %v167_v43  ;;  %v179_v55 = vld [vmem:[#allocation5 + $0x3c8] sm:$0xff]  ;;  %v376_v2 = vld [vmem:[#allocation5 + $0x9f0] sm:$0xff] }
  0x51   :  { %v185_v56 = vld [vmem:[#allocation5 + $0x3f8] sm:$0xff]  ;;  %v371_v57 = vld [vmem:[#allocation5 + $0x9c8] sm:$0xff]  ;;  %v388_v14 = vld [vmem:[#allocation5 + $0xa50] sm:$0xff] }
  0x52   :  { %v377_v58 = vld [vmem:[#allocation5 + $0x9f8] sm:$0xff]  ;;  %v950_v61 = vpack.c.bf16 %v185_v56, %v179_v55  ;;  %v191_v3 = vld [vmem:[#allocation5 + $0x428] sm:$0xff] }
  0x53   :  { %925 = vmatpush1.bf16.xpose.msra.mxu0 %v924_v50  ;;  %v1138_v50 = vpack.c.bf16 %v365_v46, %v359_v45  ;;  %v197_v4 = vld [vmem:[#allocation5 + $0x458] sm:$0xff]  ;;  %v383_v5 = vld [vmem:[#allocation5 + $0xa28] sm:$0xff] }
  0x54   :  { %1117 = vmatpush1.bf16.xpose.msra.mxu1 %v1116_v51  ;;  %927 = vmatprep.subr.bf16.mxu0 %v926_v52  ;;  %v166_v51 = vld [vmem:[#allocation5 + $0x360] sm:$0xff]  ;;  %v172_v52 = vld [vmem:[#allocation5 + $0x390] sm:$0xff]  ;;  %v389_v6 = vld [vmem:[#allocation5 + $0xa58] sm:$0xff]  ;;  %v954_v9 = vpack.c.bf16 %v197_v4, %v191_v3 }
  0x55   :  { %1119 = vmatprep.subr.bf16.mxu1 %v1118_v53  ;;  %v358_v53 = vld [vmem:[#allocation5 + $0x960] sm:$0xff]  ;;  %v948_v59 = vpack.c.bf16 %v172_v52, %v166_v51  ;;  %v203_v15 = vld [vmem:[#allocation5 + $0x488] sm:$0xff]  ;;  %v209_v16 = vld [vmem:[#allocation5 + $0x4b8] sm:$0xff] }
  0x56   :  { %v1140_v60 = vpack.c.bf16 %v364_v54, %v358_v53  ;;  %v395_v17 = vld [vmem:[#allocation5 + $0xa88] sm:$0xff]  ;;  %v401_v18 = vld [vmem:[#allocation5 + $0xab8] sm:$0xff]  ;;  %v958_v21 = vpack.c.bf16 %v209_v16, %v203_v15  ;;  %v52_v15 = vld [vmem:[#allocation2] sm:$0xff] }
  0x57   :  { %v1150_v22 = vpack.c.bf16 %v401_v18, %v395_v17  ;;  %v215_v27 = vld [vmem:[#allocation5 + $0x4e8] sm:$0xff]  ;;  %v221_v28 = vld [vmem:[#allocation5 + $0x518] sm:$0xff] }
  0x58   :  { %v407_v29 = vld [vmem:[#allocation5 + $0xae8] sm:$0xff]  ;;  %v413_v30 = vld [vmem:[#allocation5 + $0xb18] sm:$0xff]  ;;  %v962_v33 = vpack.c.bf16 %v221_v28, %v215_v27 }
  0x59   :  { %v1154_v34 = vpack.c.bf16 %v413_v30, %v407_v29  ;;  %v227_v39 = vld [vmem:[#allocation5 + $0x548] sm:$0xff]  ;;  %v233_v40 = vld [vmem:[#allocation5 + $0x578] sm:$0xff] }
  0x5a   :  { %v419_v41 = vld [vmem:[#allocation5 + $0xb48] sm:$0xff]  ;;  %v425_v42 = vld [vmem:[#allocation5 + $0xb78] sm:$0xff]  ;;  %v966_v45 = vpack.c.bf16 %v233_v40, %v227_v39 }
  0x5b   :  { %929 = vmatpush1.bf16.xpose.msra.mxu0 %v928_v62  ;;  %v1142_v62 = vpack.c.bf16 %v377_v58, %v371_v57  ;;  %v1158_v46 = vpack.c.bf16 %v425_v42, %v419_v41  ;;  %v239_v51 = vld [vmem:[#allocation5 + $0x5a8] sm:$0xff]  ;;  %v245_v52 = vld [vmem:[#allocation5 + $0x5d8] sm:$0xff] }
  0x5c   :  { %1121 = vmatpush1.bf16.xpose.msra.mxu1 %v1120_v63  ;;  %931 = vmatprep.subr.bf16.mxu0 %v930_v0  ;;  %v178_v63 = vld [vmem:[#allocation5 + $0x3c0] sm:$0xff]  ;;  %v184_v0 = vld [vmem:[#allocation5 + $0x3f0] sm:$0xff]  ;;  %v431_v53 = vld [vmem:[#allocation5 + $0xba8] sm:$0xff]  ;;  %v970_v57 = vpack.c.bf16 %v245_v52, %v239_v51 }
  0x5d   :  { %1123 = vmatprep.subr.bf16.mxu1 %v1122_v1  ;;  %v370_v1 = vld [vmem:[#allocation5 + $0x9c0] sm:$0xff]  ;;  %v952_v7 = vpack.c.bf16 %v184_v0, %v178_v63  ;;  %v437_v54 = vld [vmem:[#allocation5 + $0xbd8] sm:$0xff]  ;;  %v67_v0 = vld [vmem:[#allocation5 + $0x48] sm:$0xff] }
  0x5e   :  { %v1144_v8 = vpack.c.bf16 %v376_v2, %v370_v1  ;;  %v1162_v58 = vpack.c.bf16 %v437_v54, %v431_v53  ;;  %v61_v63 = vld [vmem:[#allocation5 + $0x18] sm:$0xff]  ;;  %v259_v2 = vld [vmem:[#allocation5 + $0x648] sm:$0xff] }
  0x5f   :  { %v253_v1 = vld [vmem:[#allocation5 + $0x618] sm:$0xff]  ;;  %v283_v28 = vld [vmem:[#allocation5 + $0x708] sm:$0xff] }
  0x60   :  { %v277_v27 = vld [vmem:[#allocation5 + $0x6d8] sm:$0xff]  ;;  %v295_v40 = vld [vmem:[#allocation5 + $0x768] sm:$0xff] }
  0x61   :  { %v289_v39 = vld [vmem:[#allocation5 + $0x738] sm:$0xff]  ;;  %v307_v52 = vld [vmem:[#allocation5 + $0x7c8] sm:$0xff] }
  0x62   :  { %v301_v51 = vld [vmem:[#allocation5 + $0x798] sm:$0xff] }
  0x63   :  { %933 = vmatpush1.bf16.xpose.msra.mxu0 %v932_v10  ;;  %v1146_v10 = vpack.c.bf16 %v389_v6, %v383_v5  ;;  %v974_v5 = vpack.c.bf16 %v67_v0, %v61_v63  ;;  %v1166_v6 = vpack.c.bf16 %v259_v2, %v253_v1  ;;  %v313_v63 = vld [vmem:[#allocation5 + $0x7f8] sm:$0xff]  ;;  %v319_v0 = vld [vmem:[#allocation5 + $0x828] sm:$0xff] }
  0x64   :  { %1125 = vmatpush1.bf16.xpose.msra.mxu1 %v1124_v11  ;;  %935 = vmatprep.subr.bf16.mxu0 %v934_v12  ;;  %v190_v11 = vld [vmem:[#allocation5 + $0x420] sm:$0xff]  ;;  %v196_v12 = vld [vmem:[#allocation5 + $0x450] sm:$0xff] }
  0x65   :  { %1127 = vmatprep.subr.bf16.mxu1 %v1126_v13  ;;  %v382_v13 = vld [vmem:[#allocation5 + $0xa20] sm:$0xff]  ;;  %v956_v19 = vpack.c.bf16 %v196_v12, %v190_v11  ;;  %v73_v11 = vld [vmem:[#allocation5 + $0x78] sm:$0xff]  ;;  %v79_v12 = vld [vmem:[#allocation5 + $0xa8] sm:$0xff] }
  0x66   :  { %v1148_v20 = vpack.c.bf16 %v388_v14, %v382_v13  ;;  %v265_v13 = vld [vmem:[#allocation5 + $0x678] sm:$0xff]  ;;  %v271_v14 = vld [vmem:[#allocation5 + $0x6a8] sm:$0xff]  ;;  %v978_v18 = vpack.c.bf16 %v79_v12, %v73_v11 }
  0x67   :  { %v325_v11 = vld [vmem:[#allocation5 + $0x858] sm:$0xff]  ;;  %v331_v12 = vld [vmem:[#allocation5 + $0x888] sm:$0xff] }
  0x6b   :  { %937 = vmatpush1.bf16.xpose.msra.mxu0 %v936_v23  ;;  %v202_v23 = vld [vmem:[#allocation5 + $0x480] sm:$0xff] }
  0x6c   :  { %1129 = vmatpush1.bf16.xpose.msra.mxu1 %v1128_v24  ;;  %939 = vmatprep.subr.bf16.mxu0 %v938_v25  ;;  %v208_v24 = vld [vmem:[#allocation5 + $0x4b0] sm:$0xff]  ;;  %v394_v25 = vld [vmem:[#allocation5 + $0xa80] sm:$0xff] }
  0x6d   :  { %1131 = vmatprep.subr.bf16.mxu1 %v1130_v26  ;;  %v400_v26 = vld [vmem:[#allocation5 + $0xab0] sm:$0xff]  ;;  %v960_v31 = vpack.c.bf16 %v208_v24, %v202_v23  ;;  %v270_v24 = vld [vmem:[#allocation5 + $0x6a0] sm:$0xff] }
  0x6e   :  { %v1152_v32 = vpack.c.bf16 %v400_v26, %v394_v25  ;;  %v264_v23 = vld [vmem:[#allocation5 + $0x670] sm:$0xff]  ;;  %v85_v25 = vld [vmem:[#allocation5 + $0xd8] sm:$0xff]  ;;  %v91_v26 = vld [vmem:[#allocation5 + $0x108] sm:$0xff] }
  0x6f   :  { %v1172_v30 = vpack.c.bf16 %v270_v24, %v264_v23  ;;  %v337_v23 = vld [vmem:[#allocation5 + $0x8b8] sm:$0xff]  ;;  %v343_v24 = vld [vmem:[#allocation5 + $0x8e8] sm:$0xff] }
  0x73   :  { %941 = vmatpush1.bf16.xpose.msra.mxu0 %v940_v35  ;;  %v214_v35 = vld [vmem:[#allocation5 + $0x4e0] sm:$0xff] }
  0x74   :  { %1133 = vmatpush1.bf16.xpose.msra.mxu1 %v1132_v36  ;;  %943 = vmatprep.subr.bf16.mxu0 %v942_v37  ;;  %v220_v36 = vld [vmem:[#allocation5 + $0x510] sm:$0xff]  ;;  %v406_v37 = vld [vmem:[#allocation5 + $0xae0] sm:$0xff] }
  0x75   :  { %1135 = vmatprep.subr.bf16.mxu1 %v1134_v38  ;;  %v412_v38 = vld [vmem:[#allocation5 + $0xb10] sm:$0xff]  ;;  %v964_v43 = vpack.c.bf16 %v220_v36, %v214_v35  ;;  %v282_v36 = vld [vmem:[#allocation5 + $0x700] sm:$0xff] }
  0x76   :  { %v1156_v44 = vpack.c.bf16 %v412_v38, %v406_v37  ;;  %v276_v35 = vld [vmem:[#allocation5 + $0x6d0] sm:$0xff]  ;;  %v97_v37 = vld [vmem:[#allocation5 + $0x138] sm:$0xff]  ;;  %v103_v38 = vld [vmem:[#allocation5 + $0x168] sm:$0xff] }
  0x77   :  { %v1176_v42 = vpack.c.bf16 %v282_v36, %v276_v35  ;;  %v349_v35 = vld [vmem:[#allocation5 + $0x918] sm:$0xff]  ;;  %v355_v36 = vld [vmem:[#allocation5 + $0x948] sm:$0xff] }
  0x7b   :  { %945 = vmatpush1.bf16.xpose.msra.mxu0 %v944_v47  ;;  %v226_v47 = vld [vmem:[#allocation5 + $0x540] sm:$0xff] }
  0x7c   :  { %1137 = vmatpush1.bf16.xpose.msra.mxu1 %v1136_v48  ;;  %947 = vmatprep.subr.bf16.mxu0 %v946_v49  ;;  %v232_v48 = vld [vmem:[#allocation5 + $0x570] sm:$0xff]  ;;  %v418_v49 = vld [vmem:[#allocation5 + $0xb40] sm:$0xff] }
  0x7d   :  { %1139 = vmatprep.subr.bf16.mxu1 %v1138_v50  ;;  %v424_v50 = vld [vmem:[#allocation5 + $0xb70] sm:$0xff]  ;;  %v968_v55 = vpack.c.bf16 %v232_v48, %v226_v47  ;;  %v294_v48 = vld [vmem:[#allocation5 + $0x760] sm:$0xff] }
  0x7e   :  { %v1160_v56 = vpack.c.bf16 %v424_v50, %v418_v49  ;;  %v288_v47 = vld [vmem:[#allocation5 + $0x730] sm:$0xff]  ;;  %v109_v49 = vld [vmem:[#allocation5 + $0x198] sm:$0xff]  ;;  %v115_v50 = vld [vmem:[#allocation5 + $0x1c8] sm:$0xff] }
  0x7f   :  { %v1180_v54 = vpack.c.bf16 %v294_v48, %v288_v47  ;;  %v361_v47 = vld [vmem:[#allocation5 + $0x978] sm:$0xff]  ;;  %v367_v48 = vld [vmem:[#allocation5 + $0x9a8] sm:$0xff] }
  0x83   :  { %949 = vmatpush1.bf16.xpose.msra.mxu0 %v948_v59  ;;  %v238_v59 = vld [vmem:[#allocation5 + $0x5a0] sm:$0xff] }
  0x84   :  { %1141 = vmatpush1.bf16.xpose.msra.mxu1 %v1140_v60  ;;  %951 = vmatprep.subr.bf16.mxu0 %v950_v61  ;;  %v244_v60 = vld [vmem:[#allocation5 + $0x5d0] sm:$0xff]  ;;  %v430_v61 = vld [vmem:[#allocation5 + $0xba0] sm:$0xff] }
  0x85   :  { %1143 = vmatprep.subr.bf16.mxu1 %v1142_v62  ;;  %v436_v62 = vld [vmem:[#allocation5 + $0xbd0] sm:$0xff]  ;;  %v972_v3 = vpack.c.bf16 %v244_v60, %v238_v59  ;;  %v306_v60 = vld [vmem:[#allocation5 + $0x7c0] sm:$0xff] }
  0x86   :  { %v1164_v4 = vpack.c.bf16 %v436_v62, %v430_v61  ;;  %v300_v59 = vld [vmem:[#allocation5 + $0x790] sm:$0xff]  ;;  %v121_v61 = vld [vmem:[#allocation5 + $0x1f8] sm:$0xff]  ;;  %v127_v62 = vld [vmem:[#allocation5 + $0x228] sm:$0xff] }
  0x87   :  { %v1184_v2 = vpack.c.bf16 %v306_v60, %v300_v59  ;;  %v373_v59 = vld [vmem:[#allocation5 + $0x9d8] sm:$0xff]  ;;  %v379_v60 = vld [vmem:[#allocation5 + $0xa08] sm:$0xff] }
  0x8b   :  { %953 = vmatpush1.bf16.xpose.msra.mxu0 %v952_v7  ;;  %v60_v7 = vld [vmem:[#allocation5 + $0x10] sm:$0xff] }
  0x8c   :  { %1145 = vmatpush1.bf16.xpose.msra.mxu1 %v1144_v8  ;;  %955 = vmatprep.subr.bf16.mxu0 %v954_v9  ;;  %v66_v8 = vld [vmem:[#allocation5 + $0x40] sm:$0xff]  ;;  %v252_v9 = vld [vmem:[#allocation5 + $0x610] sm:$0xff] }
  0x8d   :  { %1147 = vmatprep.subr.bf16.mxu1 %v1146_v10  ;;  %v258_v10 = vld [vmem:[#allocation5 + $0x640] sm:$0xff]  ;;  %v976_v16 = vpack.c.bf16 %v66_v8, %v60_v7  ;;  %v312_v7 = vld [vmem:[#allocation5 + $0x7f0] sm:$0xff] }
  0x8e   :  { %v1168_v17 = vpack.c.bf16 %v258_v10, %v252_v9  ;;  %v318_v8 = vld [vmem:[#allocation5 + $0x820] sm:$0xff]  ;;  %v133_v9 = vld [vmem:[#allocation5 + $0x258] sm:$0xff]  ;;  %v139_v10 = vld [vmem:[#allocation5 + $0x288] sm:$0xff] }
  0x93   :  { %957 = vmatpush1.bf16.xpose.msra.mxu0 %v956_v19  ;;  %v1170_v19 = vpack.c.bf16 %v271_v14, %v265_v13  ;;  %v1188_v14 = vpack.c.bf16 %v318_v8, %v312_v7  ;;  %v385_v7 = vld [vmem:[#allocation5 + $0xa38] sm:$0xff]  ;;  %v391_v8 = vld [vmem:[#allocation5 + $0xa68] sm:$0xff] }
  0x94   :  { %1149 = vmatpush1.bf16.xpose.msra.mxu1 %v1148_v20  ;;  %959 = vmatprep.subr.bf16.mxu0 %v958_v21  ;;  %v55_v20 = vld [vmem:[#allocation2 + $0x18] sm:$0xff]  ;;  %v72_v21 = vld [vmem:[#allocation5 + $0x70] sm:$0xff] }
  0x95   :  { %1151 = vmatprep.subr.bf16.mxu1 %v1150_v22  ;;  %v78_v22 = vld [vmem:[#allocation5 + $0xa0] sm:$0xff] }
  0x96   :  { %v980_v29 = vpack.c.bf16 %v78_v22, %v72_v21  ;;  %v145_v21 = vld [vmem:[#allocation5 + $0x2b8] sm:$0xff]  ;;  %v151_v22 = vld [vmem:[#allocation5 + $0x2e8] sm:$0xff] }
  0x9b   :  { %961 = vmatpush1.bf16.xpose.msra.mxu0 %v960_v31  ;;  %v982_v31 = vpack.c.bf16 %v91_v26, %v85_v25 }
  0x9c   :  { %1153 = vmatpush1.bf16.xpose.msra.mxu1 %v1152_v32  ;;  %963 = vmatprep.subr.bf16.mxu0 %v962_v33  ;;  %v1174_v32 = vpack.c.bf16 %v283_v28, %v277_v27  ;;  %v84_v33 = vld [vmem:[#allocation5 + $0xd0] sm:$0xff]  ;;  %v1002_v27 = vpack.c.bf16 %v151_v22, %v145_v21  ;;  %v1194_v28 = vpack.c.bf16 %v343_v24, %v337_v23 }
  0x9d   :  { %1155 = vmatprep.subr.bf16.mxu1 %v1154_v34  ;;  %v90_v34 = vld [vmem:[#allocation5 + $0x100] sm:$0xff] }
  0x9e   :  { %v984_v41 = vpack.c.bf16 %v90_v34, %v84_v33  ;;  %v157_v33 = vld [vmem:[#allocation5 + $0x318] sm:$0xff]  ;;  %v163_v34 = vld [vmem:[#allocation5 + $0x348] sm:$0xff] }
  0xa3   :  { %965 = vmatpush1.bf16.xpose.msra.mxu0 %v964_v43  ;;  %v986_v43 = vpack.c.bf16 %v103_v38, %v97_v37 }
  0xa4   :  { %1157 = vmatpush1.bf16.xpose.msra.mxu1 %v1156_v44  ;;  %967 = vmatprep.subr.bf16.mxu0 %v966_v45  ;;  %v1178_v44 = vpack.c.bf16 %v295_v40, %v289_v39  ;;  %v96_v45 = vld [vmem:[#allocation5 + $0x130] sm:$0xff]  ;;  %v1006_v39 = vpack.c.bf16 %v163_v34, %v157_v33  ;;  %v1198_v40 = vpack.c.bf16 %v355_v36, %v349_v35 }
  0xa5   :  { %1159 = vmatprep.subr.bf16.mxu1 %v1158_v46  ;;  %v102_v46 = vld [vmem:[#allocation5 + $0x160] sm:$0xff] }
  0xa6   :  { %v988_v53 = vpack.c.bf16 %v102_v46, %v96_v45  ;;  %v169_v45 = vld [vmem:[#allocation5 + $0x378] sm:$0xff]  ;;  %v175_v46 = vld [vmem:[#allocation5 + $0x3a8] sm:$0xff] }
  0xab   :  { %969 = vmatpush1.bf16.xpose.msra.mxu0 %v968_v55  ;;  %v990_v55 = vpack.c.bf16 %v115_v50, %v109_v49 }
  0xac   :  { %1161 = vmatpush1.bf16.xpose.msra.mxu1 %v1160_v56  ;;  %971 = vmatprep.subr.bf16.mxu0 %v970_v57  ;;  %v1182_v56 = vpack.c.bf16 %v307_v52, %v301_v51  ;;  %v108_v57 = vld [vmem:[#allocation5 + $0x190] sm:$0xff]  ;;  %v1010_v51 = vpack.c.bf16 %v175_v46, %v169_v45  ;;  %v1202_v52 = vpack.c.bf16 %v367_v48, %v361_v47 }
  0xad   :  { %1163 = vmatprep.subr.bf16.mxu1 %v1162_v58  ;;  %v114_v58 = vld [vmem:[#allocation5 + $0x1c0] sm:$0xff] }
  0xae   :  { %v992_v1 = vpack.c.bf16 %v114_v58, %v108_v57  ;;  %v181_v57 = vld [vmem:[#allocation5 + $0x3d8] sm:$0xff]  ;;  %v187_v58 = vld [vmem:[#allocation5 + $0x408] sm:$0xff] }
  0xb3   :  { %973 = vmatpush1.bf16.xpose.msra.mxu0 %v972_v3  ;;  %v994_v3 = vpack.c.bf16 %v127_v62, %v121_v61 }
  0xb4   :  { %1165 = vmatpush1.bf16.xpose.msra.mxu1 %v1164_v4  ;;  %975 = vmatprep.subr.bf16.mxu0 %v974_v5  ;;  %v1186_v4 = vpack.c.bf16 %v319_v0, %v313_v63  ;;  %v120_v5 = vld [vmem:[#allocation5 + $0x1f0] sm:$0xff]  ;;  %v1014_v63 = vpack.c.bf16 %v187_v58, %v181_v57  ;;  %v1206_v0 = vpack.c.bf16 %v379_v60, %v373_v59 }
  0xb5   :  { %1167 = vmatprep.subr.bf16.mxu1 %v1166_v6  ;;  %v126_v6 = vld [vmem:[#allocation5 + $0x220] sm:$0xff] }
  0xb6   :  { %v996_v13 = vpack.c.bf16 %v126_v6, %v120_v5  ;;  %v193_v5 = vld [vmem:[#allocation5 + $0x438] sm:$0xff]  ;;  %v199_v6 = vld [vmem:[#allocation5 + $0x468] sm:$0xff] }
  0xba   :  { %529 = vmatmul.mubr.f32.vlgmr.msra.gmra.mrb[0].mxu0 %v52_v15 }
  0xbb   :  { %977 = vmatpush1.bf16.xpose.msra.mxu0 %v976_v16  ;;  %742 = vmatmul.mubr.f32.vlgmr.msra.gmra.mrb[0].mxu1 %v52_v15  ;;  %v998_v15 = vpack.c.bf16 %v139_v10, %v133_v9  ;;  %v1190_v16 = vpack.c.bf16 %v331_v12, %v325_v11  ;;  %v1018_v11 = vpack.c.bf16 %v199_v6, %v193_v5 }
  0xbc   :  { %1169 = vmatpush1.bf16.xpose.msra.mxu1 %v1168_v17  ;;  %979 = vmatprep.subr.bf16.mxu0 %v978_v18  ;;  %v132_v17 = vld [vmem:[#allocation5 + $0x250] sm:$0xff]  ;;  %v138_v18 = vld [vmem:[#allocation5 + $0x280] sm:$0xff]  ;;  %v1210_v12 = vpack.c.bf16 %v391_v8, %v385_v7 }
  0xbd   :  { %1171 = vmatprep.subr.bf16.mxu1 %v1170_v19  ;;  %599 = vmatprep.mubr.f32.mxu0 %v55_v20  ;;  %v324_v19 = vld [vmem:[#allocation5 + $0x850] sm:$0xff]  ;;  %v1000_v25 = vpack.c.bf16 %v138_v18, %v132_v17  ;;  %v205_v17 = vld [vmem:[#allocation5 + $0x498] sm:$0xff]  ;;  %v211_v18 = vld [vmem:[#allocation5 + $0x4c8] sm:$0xff] }
  0xbe   :  { %812 = vmatprep.mubr.f32.mxu1 %v55_v20  ;;  %v330_v20 = vld [vmem:[#allocation5 + $0x880] sm:$0xff]  ;;  %v1022_v23 = vpack.c.bf16 %v211_v18, %v205_v17 }
  0xbf   :  { %v1192_v26 = vpack.c.bf16 %v330_v20, %v324_v19  ;;  %v397_v19 = vld [vmem:[#allocation5 + $0xa98] sm:$0xff]  ;;  %v403_v20 = vld [vmem:[#allocation5 + $0xac8] sm:$0xff]  ;;  %v54_v17 = vld [vmem:[#allocation2 + $0x10] sm:$0xff] }
  0xc0   :  { %v1214_v24 = vpack.c.bf16 %v403_v20, %v397_v19 }
  0xc3   :  { %981 = vmatpush1.bf16.xpose.msra.mxu0 %v980_v29  ;;  %v144_v29 = vld [vmem:[#allocation5 + $0x2b0] sm:$0xff] }
  0xc4   :  { %1173 = vmatpush1.bf16.xpose.msra.mxu1 %v1172_v30  ;;  %983 = vmatprep.subr.bf16.mxu0 %v982_v31  ;;  %v150_v30 = vld [vmem:[#allocation5 + $0x2e0] sm:$0xff]  ;;  %v336_v31 = vld [vmem:[#allocation5 + $0x8b0] sm:$0xff] }
  0xc5   :  { %1175 = vmatprep.subr.bf16.mxu1 %v1174_v32  ;;  %v342_v32 = vld [vmem:[#allocation5 + $0x8e0] sm:$0xff]  ;;  %v1004_v37 = vpack.c.bf16 %v150_v30, %v144_v29  ;;  %v217_v29 = vld [vmem:[#allocation5 + $0x4f8] sm:$0xff]  ;;  %v223_v30 = vld [vmem:[#allocation5 + $0x528] sm:$0xff] }
  0xc6   :  { %v1196_v38 = vpack.c.bf16 %v342_v32, %v336_v31  ;;  %v409_v31 = vld [vmem:[#allocation5 + $0xaf8] sm:$0xff]  ;;  %v415_v32 = vld [vmem:[#allocation5 + $0xb28] sm:$0xff]  ;;  %v1026_v35 = vpack.c.bf16 %v223_v30, %v217_v29 }
  0xc7   :  { %v1218_v36 = vpack.c.bf16 %v415_v32, %v409_v31  ;;  %v279_v29 = vld [vmem:[#allocation5 + $0x6e8] sm:$0xff]  ;;  %v285_v30 = vld [vmem:[#allocation5 + $0x718] sm:$0xff] }
  0xcb   :  { %985 = vmatpush1.bf16.xpose.msra.mxu0 %v984_v41  ;;  %v156_v41 = vld [vmem:[#allocation5 + $0x310] sm:$0xff] }
  0xcc   :  { %1177 = vmatpush1.bf16.xpose.msra.mxu1 %v1176_v42  ;;  %987 = vmatprep.subr.bf16.mxu0 %v986_v43  ;;  %v162_v42 = vld [vmem:[#allocation5 + $0x340] sm:$0xff]  ;;  %v348_v43 = vld [vmem:[#allocation5 + $0x910] sm:$0xff] }
  0xcd   :  { %1179 = vmatprep.subr.bf16.mxu1 %v1178_v44  ;;  %v354_v44 = vld [vmem:[#allocation5 + $0x940] sm:$0xff]  ;;  %v1008_v49 = vpack.c.bf16 %v162_v42, %v156_v41  ;;  %v229_v41 = vld [vmem:[#allocation5 + $0x558] sm:$0xff]  ;;  %v235_v42 = vld [vmem:[#allocation5 + $0x588] sm:$0xff] }
  0xce   :  { %v1200_v50 = vpack.c.bf16 %v354_v44, %v348_v43  ;;  %v421_v43 = vld [vmem:[#allocation5 + $0xb58] sm:$0xff]  ;;  %v427_v44 = vld [vmem:[#allocation5 + $0xb88] sm:$0xff]  ;;  %v1030_v47 = vpack.c.bf16 %v235_v42, %v229_v41 }
  0xcf   :  { %v1222_v48 = vpack.c.bf16 %v427_v44, %v421_v43  ;;  %v291_v41 = vld [vmem:[#allocation5 + $0x748] sm:$0xff]  ;;  %v297_v42 = vld [vmem:[#allocation5 + $0x778] sm:$0xff] }
  0xd3   :  { %989 = vmatpush1.bf16.xpose.msra.mxu0 %v988_v53  ;;  %v168_v53 = vld [vmem:[#allocation5 + $0x370] sm:$0xff] }
  0xd4   :  { %1181 = vmatpush1.bf16.xpose.msra.mxu1 %v1180_v54  ;;  %991 = vmatprep.subr.bf16.mxu0 %v990_v55  ;;  %v174_v54 = vld [vmem:[#allocation5 + $0x3a0] sm:$0xff]  ;;  %v360_v55 = vld [vmem:[#allocation5 + $0x970] sm:$0xff] }
  0xd5   :  { %1183 = vmatprep.subr.bf16.mxu1 %v1182_v56  ;;  %v366_v56 = vld [vmem:[#allocation5 + $0x9a0] sm:$0xff]  ;;  %v1012_v61 = vpack.c.bf16 %v174_v54, %v168_v53  ;;  %v241_v53 = vld [vmem:[#allocation5 + $0x5b8] sm:$0xff]  ;;  %v247_v54 = vld [vmem:[#allocation5 + $0x5e8] sm:$0xff] }
  0xd6   :  { %v1204_v62 = vpack.c.bf16 %v366_v56, %v360_v55  ;;  %v433_v55 = vld [vmem:[#allocation5 + $0xbb8] sm:$0xff]  ;;  %v439_v56 = vld [vmem:[#allocation5 + $0xbe8] sm:$0xff]  ;;  %v1034_v59 = vpack.c.bf16 %v247_v54, %v241_v53 }
  0xd7   :  { %v1226_v60 = vpack.c.bf16 %v439_v56, %v433_v55  ;;  %v303_v53 = vld [vmem:[#allocation5 + $0x7a8] sm:$0xff]  ;;  %v309_v54 = vld [vmem:[#allocation5 + $0x7d8] sm:$0xff] }
  0xdb   :  { %993 = vmatpush1.bf16.xpose.msra.mxu0 %v992_v1  ;;  %v180_v1 = vld [vmem:[#allocation5 + $0x3d0] sm:$0xff] }
  0xdc   :  { %1185 = vmatpush1.bf16.xpose.msra.mxu1 %v1184_v2  ;;  %995 = vmatprep.subr.bf16.mxu0 %v994_v3  ;;  %v186_v2 = vld [vmem:[#allocation5 + $0x400] sm:$0xff]  ;;  %v372_v3 = vld [vmem:[#allocation5 + $0x9d0] sm:$0xff] }
  0xdd   :  { %1187 = vmatprep.subr.bf16.mxu1 %v1186_v4  ;;  %v378_v4 = vld [vmem:[#allocation5 + $0xa00] sm:$0xff]  ;;  %v1016_v9 = vpack.c.bf16 %v186_v2, %v180_v1  ;;  %v63_v1 = vld [vmem:[#allocation5 + $0x28] sm:$0xff]  ;;  %v69_v2 = vld [vmem:[#allocation5 + $0x58] sm:$0xff] }
  0xde   :  { %v1208_v10 = vpack.c.bf16 %v378_v4, %v372_v3  ;;  %v255_v3 = vld [vmem:[#allocation5 + $0x628] sm:$0xff]  ;;  %v261_v4 = vld [vmem:[#allocation5 + $0x658] sm:$0xff]  ;;  %v1038_v7 = vpack.c.bf16 %v69_v2, %v63_v1 }
  0xdf   :  { %v1230_v8 = vpack.c.bf16 %v261_v4, %v255_v3  ;;  %v315_v1 = vld [vmem:[#allocation5 + $0x808] sm:$0xff]  ;;  %v321_v2 = vld [vmem:[#allocation5 + $0x838] sm:$0xff] }
  0xe3   :  { %997 = vmatpush1.bf16.xpose.msra.mxu0 %v996_v13  ;;  %v192_v13 = vld [vmem:[#allocation5 + $0x430] sm:$0xff] }
  0xe4   :  { %1189 = vmatpush1.bf16.xpose.msra.mxu1 %v1188_v14  ;;  %999 = vmatprep.subr.bf16.mxu0 %v998_v15  ;;  %v198_v14 = vld [vmem:[#allocation5 + $0x460] sm:$0xff]  ;;  %v384_v15 = vld [vmem:[#allocation5 + $0xa30] sm:$0xff] }
  0xe5   :  { %1191 = vmatprep.subr.bf16.mxu1 %v1190_v16  ;;  %v390_v16 = vld [vmem:[#allocation5 + $0xa60] sm:$0xff]  ;;  %v1020_v21 = vpack.c.bf16 %v198_v14, %v192_v13  ;;  %v75_v13 = vld [vmem:[#allocation5 + $0x88] sm:$0xff]  ;;  %v81_v14 = vld [vmem:[#allocation5 + $0xb8] sm:$0xff] }
  0xe6   :  { %v1212_v22 = vpack.c.bf16 %v390_v16, %v384_v15  ;;  %v267_v15 = vld [vmem:[#allocation5 + $0x688] sm:$0xff]  ;;  %v273_v16 = vld [vmem:[#allocation5 + $0x6b8] sm:$0xff]  ;;  %v1042_v20 = vpack.c.bf16 %v81_v14, %v75_v13 }
  0xe7   :  { %v327_v13 = vld [vmem:[#allocation5 + $0x868] sm:$0xff]  ;;  %v333_v14 = vld [vmem:[#allocation5 + $0x898] sm:$0xff] }
  0xeb   :  { %1001 = vmatpush1.bf16.xpose.msra.mxu0 %v1000_v25  ;;  %v204_v25 = vld [vmem:[#allocation5 + $0x490] sm:$0xff] }
  0xec   :  { %1193 = vmatpush1.bf16.xpose.msra.mxu1 %v1192_v26  ;;  %1003 = vmatprep.subr.bf16.mxu0 %v1002_v27  ;;  %v210_v26 = vld [vmem:[#allocation5 + $0x4c0] sm:$0xff]  ;;  %v396_v27 = vld [vmem:[#allocation5 + $0xa90] sm:$0xff] }
  0xed   :  { %1195 = vmatprep.subr.bf16.mxu1 %v1194_v28  ;;  %v402_v28 = vld [vmem:[#allocation5 + $0xac0] sm:$0xff]  ;;  %v1024_v33 = vpack.c.bf16 %v210_v26, %v204_v25  ;;  %v272_v26 = vld [vmem:[#allocation5 + $0x6b0] sm:$0xff] }
  0xee   :  { %v1216_v34 = vpack.c.bf16 %v402_v28, %v396_v27  ;;  %v266_v25 = vld [vmem:[#allocation5 + $0x680] sm:$0xff]  ;;  %v87_v27 = vld [vmem:[#allocation5 + $0xe8] sm:$0xff]  ;;  %v93_v28 = vld [vmem:[#allocation5 + $0x118] sm:$0xff] }
  0xef   :  { %v1236_v32 = vpack.c.bf16 %v272_v26, %v266_v25  ;;  %v339_v25 = vld [vmem:[#allocation5 + $0x8c8] sm:$0xff]  ;;  %v345_v26 = vld [vmem:[#allocation5 + $0x8f8] sm:$0xff] }
  0xf3   :  { %1005 = vmatpush1.bf16.xpose.msra.mxu0 %v1004_v37  ;;  %v216_v37 = vld [vmem:[#allocation5 + $0x4f0] sm:$0xff] }
  0xf4   :  { %1197 = vmatpush1.bf16.xpose.msra.mxu1 %v1196_v38  ;;  %1007 = vmatprep.subr.bf16.mxu0 %v1006_v39  ;;  %v222_v38 = vld [vmem:[#allocation5 + $0x520] sm:$0xff]  ;;  %v408_v39 = vld [vmem:[#allocation5 + $0xaf0] sm:$0xff] }
  0xf5   :  { %1199 = vmatprep.subr.bf16.mxu1 %v1198_v40  ;;  %v414_v40 = vld [vmem:[#allocation5 + $0xb20] sm:$0xff]  ;;  %v1028_v45 = vpack.c.bf16 %v222_v38, %v216_v37  ;;  %v284_v38 = vld [vmem:[#allocation5 + $0x710] sm:$0xff] }
  0xf6   :  { %v1220_v46 = vpack.c.bf16 %v414_v40, %v408_v39  ;;  %v278_v37 = vld [vmem:[#allocation5 + $0x6e0] sm:$0xff]  ;;  %v99_v39 = vld [vmem:[#allocation5 + $0x148] sm:$0xff]  ;;  %v105_v40 = vld [vmem:[#allocation5 + $0x178] sm:$0xff] }
  0xf7   :  { %v1240_v44 = vpack.c.bf16 %v284_v38, %v278_v37  ;;  %v351_v37 = vld [vmem:[#allocation5 + $0x928] sm:$0xff]  ;;  %v357_v38 = vld [vmem:[#allocation5 + $0x958] sm:$0xff] }
  0xfb   :  { %1009 = vmatpush1.bf16.xpose.msra.mxu0 %v1008_v49  ;;  %v228_v49 = vld [vmem:[#allocation5 + $0x550] sm:$0xff] }
  0xfc   :  { %1201 = vmatpush1.bf16.xpose.msra.mxu1 %v1200_v50  ;;  %1011 = vmatprep.subr.bf16.mxu0 %v1010_v51  ;;  %v234_v50 = vld [vmem:[#allocation5 + $0x580] sm:$0xff]  ;;  %v420_v51 = vld [vmem:[#allocation5 + $0xb50] sm:$0xff] }
  0xfd   :  { %1203 = vmatprep.subr.bf16.mxu1 %v1202_v52  ;;  %v426_v52 = vld [vmem:[#allocation5 + $0xb80] sm:$0xff]  ;;  %v1032_v57 = vpack.c.bf16 %v234_v50, %v228_v49  ;;  %v296_v50 = vld [vmem:[#allocation5 + $0x770] sm:$0xff] }
  0xfe   :  { %v1224_v58 = vpack.c.bf16 %v426_v52, %v420_v51  ;;  %v290_v49 = vld [vmem:[#allocation5 + $0x740] sm:$0xff]  ;;  %v111_v51 = vld [vmem:[#allocation5 + $0x1a8] sm:$0xff]  ;;  %v117_v52 = vld [vmem:[#allocation5 + $0x1d8] sm:$0xff] }
  0xff   :  { %v1244_v56 = vpack.c.bf16 %v296_v50, %v290_v49  ;;  %v363_v49 = vld [vmem:[#allocation5 + $0x988] sm:$0xff]  ;;  %v369_v50 = vld [vmem:[#allocation5 + $0x9b8] sm:$0xff] }
 0x103   :  { %1013 = vmatpush1.bf16.xpose.msra.mxu0 %v1012_v61  ;;  %v240_v61 = vld [vmem:[#allocation5 + $0x5b0] sm:$0xff] }
 0x104   :  { %1205 = vmatpush1.bf16.xpose.msra.mxu1 %v1204_v62  ;;  %1015 = vmatprep.subr.bf16.mxu0 %v1014_v63  ;;  %v246_v62 = vld [vmem:[#allocation5 + $0x5e0] sm:$0xff]  ;;  %v432_v63 = vld [vmem:[#allocation5 + $0xbb0] sm:$0xff] }
 0x105   :  { %1207 = vmatprep.subr.bf16.mxu1 %v1206_v0  ;;  %v438_v0 = vld [vmem:[#allocation5 + $0xbe0] sm:$0xff]  ;;  %v1036_v5 = vpack.c.bf16 %v246_v62, %v240_v61  ;;  %v308_v62 = vld [vmem:[#allocation5 + $0x7d0] sm:$0xff] }
 0x106   :  { %v1228_v6 = vpack.c.bf16 %v438_v0, %v432_v63  ;;  %v302_v61 = vld [vmem:[#allocation5 + $0x7a0] sm:$0xff]  ;;  %v123_v63 = vld [vmem:[#allocation5 + $0x208] sm:$0xff]  ;;  %v129_v0 = vld [vmem:[#allocation5 + $0x238] sm:$0xff] }
 0x107   :  { %v1248_v4 = vpack.c.bf16 %v308_v62, %v302_v61  ;;  %v375_v61 = vld [vmem:[#allocation5 + $0x9e8] sm:$0xff]  ;;  %v381_v62 = vld [vmem:[#allocation5 + $0xa18] sm:$0xff] }
 0x10b   :  { %1017 = vmatpush1.bf16.xpose.msra.mxu0 %v1016_v9  ;;  %v62_v9 = vld [vmem:[#allocation5 + $0x20] sm:$0xff] }
 0x10c   :  { %1209 = vmatpush1.bf16.xpose.msra.mxu1 %v1208_v10  ;;  %1019 = vmatprep.subr.bf16.mxu0 %v1018_v11  ;;  %v68_v10 = vld [vmem:[#allocation5 + $0x50] sm:$0xff]  ;;  %v254_v11 = vld [vmem:[#allocation5 + $0x620] sm:$0xff] }
 0x10d   :  { %1211 = vmatprep.subr.bf16.mxu1 %v1210_v12  ;;  %v260_v12 = vld [vmem:[#allocation5 + $0x650] sm:$0xff]  ;;  %v1040_v18 = vpack.c.bf16 %v68_v10, %v62_v9  ;;  %v314_v9 = vld [vmem:[#allocation5 + $0x800] sm:$0xff] }
 0x10e   :  { %v1232_v19 = vpack.c.bf16 %v260_v12, %v254_v11  ;;  %v320_v10 = vld [vmem:[#allocation5 + $0x830] sm:$0xff]  ;;  %v135_v11 = vld [vmem:[#allocation5 + $0x268] sm:$0xff]  ;;  %v141_v12 = vld [vmem:[#allocation5 + $0x298] sm:$0xff] }
 0x113   :  { %1021 = vmatpush1.bf16.xpose.msra.mxu0 %v1020_v21  ;;  %v1234_v21 = vpack.c.bf16 %v273_v16, %v267_v15  ;;  %v1252_v16 = vpack.c.bf16 %v320_v10, %v314_v9  ;;  %v387_v9 = vld [vmem:[#allocation5 + $0xa48] sm:$0xff]  ;;  %v393_v10 = vld [vmem:[#allocation5 + $0xa78] sm:$0xff] }
 0x114   :  { %1213 = vmatpush1.bf16.xpose.msra.mxu1 %v1212_v22  ;;  %1023 = vmatprep.subr.bf16.mxu0 %v1022_v23  ;;  %v57_v22 = vld [vmem:[#allocation2 + $0x28] sm:$0xff]  ;;  %v74_v23 = vld [vmem:[#allocation5 + $0x80] sm:$0xff] }
 0x115   :  { %1215 = vmatprep.subr.bf16.mxu1 %v1214_v24  ;;  %v80_v24 = vld [vmem:[#allocation5 + $0xb0] sm:$0xff] }
 0x116   :  { %v1044_v31 = vpack.c.bf16 %v80_v24, %v74_v23  ;;  %v147_v23 = vld [vmem:[#allocation5 + $0x2c8] sm:$0xff]  ;;  %v153_v24 = vld [vmem:[#allocation5 + $0x2f8] sm:$0xff] }
 0x11b   :  { %1025 = vmatpush1.bf16.xpose.msra.mxu0 %v1024_v33  ;;  %v1046_v33 = vpack.c.bf16 %v93_v28, %v87_v27 }
 0x11c   :  { %1217 = vmatpush1.bf16.xpose.msra.mxu1 %v1216_v34  ;;  %1027 = vmatprep.subr.bf16.mxu0 %v1026_v35  ;;  %v1238_v34 = vpack.c.bf16 %v285_v30, %v279_v29  ;;  %v86_v35 = vld [vmem:[#allocation5 + $0xe0] sm:$0xff]  ;;  %v1066_v29 = vpack.c.bf16 %v153_v24, %v147_v23  ;;  %v1258_v30 = vpack.c.bf16 %v345_v26, %v339_v25 }
 0x11d   :  { %1219 = vmatprep.subr.bf16.mxu1 %v1218_v36  ;;  %v92_v36 = vld [vmem:[#allocation5 + $0x110] sm:$0xff] }
 0x11e   :  { %v1048_v43 = vpack.c.bf16 %v92_v36, %v86_v35  ;;  %v159_v35 = vld [vmem:[#allocation5 + $0x328] sm:$0xff]  ;;  %v165_v36 = vld [vmem:[#allocation5 + $0x358] sm:$0xff] }
 0x123   :  { %1029 = vmatpush1.bf16.xpose.msra.mxu0 %v1028_v45  ;;  %v1050_v45 = vpack.c.bf16 %v105_v40, %v99_v39 }
 0x124   :  { %1221 = vmatpush1.bf16.xpose.msra.mxu1 %v1220_v46  ;;  %1031 = vmatprep.subr.bf16.mxu0 %v1030_v47  ;;  %v1242_v46 = vpack.c.bf16 %v297_v42, %v291_v41  ;;  %v98_v47 = vld [vmem:[#allocation5 + $0x140] sm:$0xff]  ;;  %v1070_v41 = vpack.c.bf16 %v165_v36, %v159_v35  ;;  %v1262_v42 = vpack.c.bf16 %v357_v38, %v351_v37 }
 0x125   :  { %1223 = vmatprep.subr.bf16.mxu1 %v1222_v48  ;;  %v104_v48 = vld [vmem:[#allocation5 + $0x170] sm:$0xff] }
 0x126   :  { %v1052_v55 = vpack.c.bf16 %v104_v48, %v98_v47  ;;  %v171_v47 = vld [vmem:[#allocation5 + $0x388] sm:$0xff]  ;;  %v177_v48 = vld [vmem:[#allocation5 + $0x3b8] sm:$0xff] }
 0x12b   :  { %1033 = vmatpush1.bf16.xpose.msra.mxu0 %v1032_v57  ;;  %v1054_v57 = vpack.c.bf16 %v117_v52, %v111_v51 }
 0x12c   :  { %1225 = vmatpush1.bf16.xpose.msra.mxu1 %v1224_v58  ;;  %1035 = vmatprep.subr.bf16.mxu0 %v1034_v59  ;;  %v1246_v58 = vpack.c.bf16 %v309_v54, %v303_v53  ;;  %v110_v59 = vld [vmem:[#allocation5 + $0x1a0] sm:$0xff]  ;;  %v1074_v53 = vpack.c.bf16 %v177_v48, %v171_v47  ;;  %v1266_v54 = vpack.c.bf16 %v369_v50, %v363_v49 }
 0x12d   :  { %1227 = vmatprep.subr.bf16.mxu1 %v1226_v60  ;;  %v116_v60 = vld [vmem:[#allocation5 + $0x1d0] sm:$0xff] }
 0x12e   :  { %v1056_v3 = vpack.c.bf16 %v116_v60, %v110_v59  ;;  %v183_v59 = vld [vmem:[#allocation5 + $0x3e8] sm:$0xff]  ;;  %v189_v60 = vld [vmem:[#allocation5 + $0x418] sm:$0xff] }
 0x133   :  { %1037 = vmatpush1.bf16.xpose.msra.mxu0 %v1036_v5  ;;  %v1058_v5 = vpack.c.bf16 %v129_v0, %v123_v63 }
 0x134   :  { %1229 = vmatpush1.bf16.xpose.msra.mxu1 %v1228_v6  ;;  %1039 = vmatprep.subr.bf16.mxu0 %v1038_v7  ;;  %v1250_v6 = vpack.c.bf16 %v321_v2, %v315_v1  ;;  %v122_v7 = vld [vmem:[#allocation5 + $0x200] sm:$0xff]  ;;  %v1078_v1 = vpack.c.bf16 %v189_v60, %v183_v59  ;;  %v1270_v2 = vpack.c.bf16 %v381_v62, %v375_v61 }
 0x135   :  { %1231 = vmatprep.subr.bf16.mxu1 %v1230_v8  ;;  %v128_v8 = vld [vmem:[#allocation5 + $0x230] sm:$0xff] }
 0x136   :  { %v1060_v15 = vpack.c.bf16 %v128_v8, %v122_v7  ;;  %v195_v7 = vld [vmem:[#allocation5 + $0x448] sm:$0xff]  ;;  %v201_v8 = vld [vmem:[#allocation5 + $0x478] sm:$0xff] }
 0x13a   :  { %600 = vmatmul.mubr.f32.vlgmr.msra.gmra.mrb[0].mxu0 %v54_v17 }
 0x13b   :  { %1041 = vmatpush1.bf16.xpose.msra.mxu0 %v1040_v18  ;;  %813 = vmatmul.mubr.f32.vlgmr.msra.gmra.mrb[0].mxu1 %v54_v17  ;;  %v1062_v17 = vpack.c.bf16 %v141_v12, %v135_v11  ;;  %v1254_v18 = vpack.c.bf16 %v333_v14, %v327_v13  ;;  %v1082_v13 = vpack.c.bf16 %v201_v8, %v195_v7 }
 0x13c   :  { %1233 = vmatpush1.bf16.xpose.msra.mxu1 %v1232_v19  ;;  %1043 = vmatprep.subr.bf16.mxu0 %v1042_v20  ;;  %v134_v19 = vld [vmem:[#allocation5 + $0x260] sm:$0xff]  ;;  %v140_v20 = vld [vmem:[#allocation5 + $0x290] sm:$0xff]  ;;  %v1274_v14 = vpack.c.bf16 %v393_v10, %v387_v9 }
 0x13d   :  { %1235 = vmatprep.subr.bf16.mxu1 %v1234_v21  ;;  %670 = vmatprep.mubr.f32.mxu0 %v57_v22  ;;  %v326_v21 = vld [vmem:[#allocation5 + $0x860] sm:$0xff]  ;;  %v1064_v27 = vpack.c.bf16 %v140_v20, %v134_v19  ;;  %v207_v19 = vld [vmem:[#allocation5 + $0x4a8] sm:$0xff]  ;;  %v213_v20 = vld [vmem:[#allocation5 + $0x4d8] sm:$0xff] }
 0x13e   :  { %883 = vmatprep.mubr.f32.mxu1 %v57_v22  ;;  %v332_v22 = vld [vmem:[#allocation5 + $0x890] sm:$0xff]  ;;  %v1086_v25 = vpack.c.bf16 %v213_v20, %v207_v19  ;;  %v442_v9 = vld [vmem:[#allocation7] sm:$0xf] }
 0x13f   :  { %v1256_v28 = vpack.c.bf16 %v332_v22, %v326_v21  ;;  %v399_v21 = vld [vmem:[#allocation5 + $0xaa8] sm:$0xff]  ;;  %v405_v22 = vld [vmem:[#allocation5 + $0xad8] sm:$0xff] }
 0x140   :  { %v1278_v26 = vpack.c.bf16 %v405_v22, %v399_v21 }
 0x143   :  { %1045 = vmatpush1.bf16.xpose.msra.mxu0 %v1044_v31  ;;  %v146_v31 = vld [vmem:[#allocation5 + $0x2c0] sm:$0xff] }
 0x144   :  { %1237 = vmatpush1.bf16.xpose.msra.mxu1 %v1236_v32  ;;  %1047 = vmatprep.subr.bf16.mxu0 %v1046_v33  ;;  %v152_v32 = vld [vmem:[#allocation5 + $0x2f0] sm:$0xff]  ;;  %v338_v33 = vld [vmem:[#allocation5 + $0x8c0] sm:$0xff] }
 0x145   :  { %1239 = vmatprep.subr.bf16.mxu1 %v1238_v34  ;;  %v344_v34 = vld [vmem:[#allocation5 + $0x8f0] sm:$0xff]  ;;  %v1068_v39 = vpack.c.bf16 %v152_v32, %v146_v31  ;;  %v219_v31 = vld [vmem:[#allocation5 + $0x508] sm:$0xff]  ;;  %v225_v32 = vld [vmem:[#allocation5 + $0x538] sm:$0xff] }
 0x146   :  { %v1260_v40 = vpack.c.bf16 %v344_v34, %v338_v33  ;;  %v411_v33 = vld [vmem:[#allocation5 + $0xb08] sm:$0xff]  ;;  %v417_v34 = vld [vmem:[#allocation5 + $0xb38] sm:$0xff]  ;;  %v1090_v37 = vpack.c.bf16 %v225_v32, %v219_v31 }
 0x147   :  { %v1282_v38 = vpack.c.bf16 %v417_v34, %v411_v33 }
 0x14b   :  { %1049 = vmatpush1.bf16.xpose.msra.mxu0 %v1048_v43  ;;  %v158_v43 = vld [vmem:[#allocation5 + $0x320] sm:$0xff] }
 0x14c   :  { %1241 = vmatpush1.bf16.xpose.msra.mxu1 %v1240_v44  ;;  %1051 = vmatprep.subr.bf16.mxu0 %v1050_v45  ;;  %v164_v44 = vld [vmem:[#allocation5 + $0x350] sm:$0xff]  ;;  %v350_v45 = vld [vmem:[#allocation5 + $0x920] sm:$0xff] }
 0x14d   :  { %1243 = vmatprep.subr.bf16.mxu1 %v1242_v46  ;;  %v356_v46 = vld [vmem:[#allocation5 + $0x950] sm:$0xff]  ;;  %v1072_v51 = vpack.c.bf16 %v164_v44, %v158_v43  ;;  %v231_v43 = vld [vmem:[#allocation5 + $0x568] sm:$0xff]  ;;  %v237_v44 = vld [vmem:[#allocation5 + $0x598] sm:$0xff] }
 0x14e   :  { %v1264_v52 = vpack.c.bf16 %v356_v46, %v350_v45  ;;  %v423_v45 = vld [vmem:[#allocation5 + $0xb68] sm:$0xff]  ;;  %v429_v46 = vld [vmem:[#allocation5 + $0xb98] sm:$0xff]  ;;  %v1094_v49 = vpack.c.bf16 %v237_v44, %v231_v43 }
 0x14f   :  { %v1286_v50 = vpack.c.bf16 %v429_v46, %v423_v45 }
 0x153   :  { %1053 = vmatpush1.bf16.xpose.msra.mxu0 %v1052_v55  ;;  %v170_v55 = vld [vmem:[#allocation5 + $0x380] sm:$0xff] }
 0x154   :  { %1245 = vmatpush1.bf16.xpose.msra.mxu1 %v1244_v56  ;;  %1055 = vmatprep.subr.bf16.mxu0 %v1054_v57  ;;  %v176_v56 = vld [vmem:[#allocation5 + $0x3b0] sm:$0xff]  ;;  %v362_v57 = vld [vmem:[#allocation5 + $0x980] sm:$0xff] }
 0x155   :  { %1247 = vmatprep.subr.bf16.mxu1 %v1246_v58  ;;  %v368_v58 = vld [vmem:[#allocation5 + $0x9b0] sm:$0xff]  ;;  %v1076_v63 = vpack.c.bf16 %v176_v56, %v170_v55  ;;  %v243_v55 = vld [vmem:[#allocation5 + $0x5c8] sm:$0xff]  ;;  %v249_v56 = vld [vmem:[#allocation5 + $0x5f8] sm:$0xff] }
 0x156   :  { %v1268_v0 = vpack.c.bf16 %v368_v58, %v362_v57  ;;  %v435_v57 = vld [vmem:[#allocation5 + $0xbc8] sm:$0xff]  ;;  %v441_v58 = vld [vmem:[#allocation5 + $0xbf8] sm:$0xff]  ;;  %v1098_v61 = vpack.c.bf16 %v249_v56, %v243_v55 }
 0x157   :  { %v1290_v62 = vpack.c.bf16 %v441_v58, %v435_v57 }
 0x15b   :  { %1057 = vmatpush1.bf16.xpose.msra.mxu0 %v1056_v3  ;;  %v182_v3 = vld [vmem:[#allocation5 + $0x3e0] sm:$0xff] }
 0x15c   :  { %1249 = vmatpush1.bf16.xpose.msra.mxu1 %v1248_v4  ;;  %1059 = vmatprep.subr.bf16.mxu0 %v1058_v5  ;;  %v188_v4 = vld [vmem:[#allocation5 + $0x410] sm:$0xff]  ;;  %v374_v5 = vld [vmem:[#allocation5 + $0x9e0] sm:$0xff] }
 0x15d   :  { %1251 = vmatprep.subr.bf16.mxu1 %v1250_v6  ;;  %v380_v6 = vld [vmem:[#allocation5 + $0xa10] sm:$0xff]  ;;  %v1080_v11 = vpack.c.bf16 %v188_v4, %v182_v3 }
 0x15e   :  { %v1272_v12 = vpack.c.bf16 %v380_v6, %v374_v5  ;;  %v56_v5 = vld [vmem:[#allocation2 + $0x20] sm:$0xff]  ;;  %v444_v6 = vlaneseq }
 0x160   :  { %v445_v7 = vshrl.u32 %v444_v6, 7 }
 0x162   :  { %v446_v8 = vsub.s32 0, %v445_v7  ;;  %v454_v10 = vsub.s32 2, %v445_v7 }
 0x163   :  { %1061 = vmatpush1.bf16.xpose.msra.mxu0 %v1060_v15  ;;  %v194_v15 = vld [vmem:[#allocation5 + $0x440] sm:$0xff] }
 0x164   :  { %1253 = vmatpush1.bf16.xpose.msra.mxu1 %v1252_v16  ;;  %1063 = vmatprep.subr.bf16.mxu0 %v1062_v17  ;;  %v200_v16 = vld [vmem:[#allocation5 + $0x470] sm:$0xff]  ;;  %v386_v17 = vld [vmem:[#allocation5 + $0xa40] sm:$0xff] }
 0x165   :  { %1255 = vmatprep.subr.bf16.mxu1 %v1254_v18  ;;  %v392_v18 = vld [vmem:[#allocation5 + $0xa70] sm:$0xff]  ;;  %v1084_v23 = vpack.c.bf16 %v200_v16, %v194_v15 }
 0x166   :  { %v1276_v24 = vpack.c.bf16 %v392_v18, %v386_v17 }
 0x16b   :  { %1065 = vmatpush1.bf16.xpose.msra.mxu0 %v1064_v27  ;;  %v206_v27 = vld [vmem:[#allocation5 + $0x4a0] sm:$0xff] }
 0x16c   :  { %1257 = vmatpush1.bf16.xpose.msra.mxu1 %v1256_v28  ;;  %1067 = vmatprep.subr.bf16.mxu0 %v1066_v29  ;;  %v212_v28 = vld [vmem:[#allocation5 + $0x4d0] sm:$0xff]  ;;  %v398_v29 = vld [vmem:[#allocation5 + $0xaa0] sm:$0xff] }
 0x16d   :  { %1259 = vmatprep.subr.bf16.mxu1 %v1258_v30  ;;  %v404_v30 = vld [vmem:[#allocation5 + $0xad0] sm:$0xff]  ;;  %v1088_v35 = vpack.c.bf16 %v212_v28, %v206_v27 }
 0x16e   :  { %v1280_v36 = vpack.c.bf16 %v404_v30, %v398_v29 }
 0x173   :  { %1069 = vmatpush1.bf16.xpose.msra.mxu0 %v1068_v39  ;;  %v218_v39 = vld [vmem:[#allocation5 + $0x500] sm:$0xff] }
 0x174   :  { %1261 = vmatpush1.bf16.xpose.msra.mxu1 %v1260_v40  ;;  %1071 = vmatprep.subr.bf16.mxu0 %v1070_v41  ;;  %v224_v40 = vld [vmem:[#allocation5 + $0x530] sm:$0xff]  ;;  %v410_v41 = vld [vmem:[#allocation5 + $0xb00] sm:$0xff] }
 0x175   :  { %1263 = vmatprep.subr.bf16.mxu1 %v1262_v42  ;;  %v416_v42 = vld [vmem:[#allocation5 + $0xb30] sm:$0xff]  ;;  %v1092_v47 = vpack.c.bf16 %v224_v40, %v218_v39 }
 0x176   :  { %v1284_v48 = vpack.c.bf16 %v416_v42, %v410_v41 }
 0x17b   :  { %1073 = vmatpush1.bf16.xpose.msra.mxu0 %v1072_v51  ;;  %v230_v51 = vld [vmem:[#allocation5 + $0x560] sm:$0xff] }
 0x17c   :  { %1265 = vmatpush1.bf16.xpose.msra.mxu1 %v1264_v52  ;;  %1075 = vmatprep.subr.bf16.mxu0 %v1074_v53  ;;  %v236_v52 = vld [vmem:[#allocation5 + $0x590] sm:$0xff]  ;;  %v422_v53 = vld [vmem:[#allocation5 + $0xb60] sm:$0xff] }
 0x17d   :  { %1267 = vmatprep.subr.bf16.mxu1 %v1266_v54  ;;  %v428_v54 = vld [vmem:[#allocation5 + $0xb90] sm:$0xff]  ;;  %v1096_v59 = vpack.c.bf16 %v236_v52, %v230_v51 }
 0x17e   :  { %v1288_v60 = vpack.c.bf16 %v428_v54, %v422_v53 }
 0x183   :  { %1077 = vmatpush1.bf16.xpose.msra.mxu0 %v1076_v63  ;;  %v242_v63 = vld [vmem:[#allocation5 + $0x5c0] sm:$0xff] }
 0x184   :  { %1269 = vmatpush1.bf16.xpose.msra.mxu1 %v1268_v0  ;;  %1079 = vmatprep.subr.bf16.mxu0 %v1078_v1  ;;  %v248_v0 = vld [vmem:[#allocation5 + $0x5f0] sm:$0xff]  ;;  %v434_v1 = vld [vmem:[#allocation5 + $0xbc0] sm:$0xff] }
 0x185   :  { %1271 = vmatprep.subr.bf16.mxu1 %v1270_v2  ;;  %v440_v2 = vld [vmem:[#allocation5 + $0xbf0] sm:$0xff]  ;;  %v1100_v3 = vpack.c.bf16 %v248_v0, %v242_v63 }
 0x186   :  { %v1292_v4 = vpack.c.bf16 %v440_v2, %v434_v1 }
 0x18b   :  { %1081 = vmatpush1.bf16.xpose.msra.mxu0 %v1080_v11  ;;  %v450_v11 = vsub.s32 1, %v445_v7 }
 0x18c   :  { %1273 = vmatpush1.bf16.xpose.msra.mxu1 %v1272_v12  ;;  %1083 = vmatprep.subr.bf16.mxu0 %v1082_v13  ;;  %v458_v12 = vsub.s32 3, %v445_v7  ;;  %v447_v13 = vrot.slane %v442_v9, %v446_v8 }
 0x18d   :  { %1275 = vmatprep.subr.bf16.mxu1 %v1274_v14  ;;  %v455_v14 = vrot.slane %v442_v9, %v454_v10  ;;  %v451_v15 = vrot.slane %v442_v9, %v450_v11 }
 0x18e   :  { %v459_v16 = vrot.slane %v442_v9, %v458_v12 }
 0x193   :  { %1085 = vmatpush1.bf16.xpose.msra.mxu0 %v1084_v23 }
 0x194   :  { %1277 = vmatpush1.bf16.xpose.msra.mxu1 %v1276_v24  ;;  %1087 = vmatprep.subr.bf16.mxu0 %v1086_v25 }
 0x195   :  { %1279 = vmatprep.subr.bf16.mxu1 %v1278_v26 }
 0x19b   :  { %1089 = vmatpush1.bf16.xpose.msra.mxu0 %v1088_v35 }
 0x19c   :  { %1281 = vmatpush1.bf16.xpose.msra.mxu1 %v1280_v36  ;;  %1091 = vmatprep.subr.bf16.mxu0 %v1090_v37 }
 0x19d   :  { %1283 = vmatprep.subr.bf16.mxu1 %v1282_v38 }
 0x1a3   :  { %1093 = vmatpush1.bf16.xpose.msra.mxu0 %v1092_v47 }
 0x1a4   :  { %1285 = vmatpush1.bf16.xpose.msra.mxu1 %v1284_v48  ;;  %1095 = vmatprep.subr.bf16.mxu0 %v1094_v49 }
 0x1a5   :  { %1287 = vmatprep.subr.bf16.mxu1 %v1286_v50 }
 0x1ab   :  { %1097 = vmatpush1.bf16.xpose.msra.mxu0 %v1096_v59 }
 0x1ac   :  { %1289 = vmatpush1.bf16.xpose.msra.mxu1 %v1288_v60  ;;  %1099 = vmatprep.subr.bf16.mxu0 %v1098_v61 }
 0x1ad   :  { %1291 = vmatprep.subr.bf16.mxu1 %v1290_v62 }
 0x1b3   :  { %1101 = vmatpush1.bf16.xpose.msra.mxu0 %v1100_v3 }
 0x1b4   :  { %1293 = vmatpush1.bf16.xpose.msra.mxu1 %v1292_v4 }
 0x1ba   :  { %671 = vmatmul.mubr.f32.vlgmr.msra.gmra.mrb[0].mxu0 %v56_v5 }
 0x1bb   :  { %884 = vmatmul.mubr.f32.vlgmr.msra.gmra.mrb[0].mxu1 %v56_v5 }
 0x28d   :  { %v672_v17 = vpop.f32.mrb[0].mxu0 }
 0x28e   :  { %v1294_v18 = vadd.f32 %v672_v17, %v447_v13  ;;  %v885_v19 = vpop.f32.mrb[0].mxu1  ;;  %v674_v20 = vpop.f32.mrb[1].mxu0 }
 0x28f   :  { %v1296_v21 = vadd.f32 %v885_v19, %v455_v14  ;;  %v1295_v22 = vadd.f32 %v674_v20, %v451_v15  ;;  %v887_v23 = vpop.f32.mrb[1].mxu1 }
 0x290   :  { %890 = vst [vmem:[#allocation8] sm:$0xff] %v1294_v18  ;;  %v1297_v24 = vadd.f32 %v887_v23, %v459_v16 }
 0x291   :  { %892 = vst [vmem:[#allocation8 + $0x10] sm:$0xff] %v1296_v21  ;;  %891 = vst [vmem:[#allocation8 + $0x8] sm:$0xff] %v1295_v22 }
 0x292   :  { %893 = vst [vmem:[#allocation8 + $0x18] sm:$0xff] %v1297_v24 }
 0x293   :  { %1389 = shalt.err (!%p1386_p0)
}
 0x294   :  { %s1390_s25 = scalar_lea.hbm %s1483_s3, 512 }
 0x295   :  { %p1391_p1 = scmp.ne.s32.totalorder %s1483_s3, %s1390_s25  ;;  %p1394_p2 = scmp.lt.u32.totalorder %s1390_s25, %s1483_s3 }
 0x297   :  { %p1396_p3 = pnand %p1394_p2, %p1391_p1 }
 0x299   :  { %1399 = shalt.err (!%p1396_p3)
}
 0x29a   :  { %903 = dma.vmem_to_hbm [thread:$0]  %s901_s21, 512, %s1483_s3, [#allocation4]  }
 0x29b   :  { %1404 = dma.done.wait [#allocation4], 512  }
 0x29c   :  { %1405 = vsyncadd [#allocation4], 4294966784 }
 0x29d   :  { %907 = vsyncpa [#allocation3], 1 }
 0x29e   :  { %908 = vsyncpa [#allocation6], 1 }
 0x29f   :  { %909 = vsyncpa [#allocation4], 1 }

</bundles_post_ra>
